<compile_context>
chip_gen: v7x
topology: tpu7x:2x2x1
jax: 0.10.0
libtpu: 0.0.40
codegen_flags: <defaults>
</compile_context>

<pallas_src>
import functools

import jax
import jax.numpy as jnp
from jax import lax
from jax.experimental import pallas as pl
from jax.experimental.pallas import tpu as pltpu


def _round_up(x, m):
    return (x + m - 1) // m * m


def _cdiv(a, b):
    return -(-a // b)


def _tensorcores_per_chip():
    """Best-effort TensorCores per chip (v5e/v6e: 1, v7x: 2)."""
    try:
        info = pltpu.get_tpu_info()
        for attr in ("num_cores", "tensor_cores_per_chip",
                     "tensorcores_per_chip", "cores_per_chip"):
            v = getattr(info, attr, None)
            if v:
                return max(1, min(2, int(v)))
    except Exception:
        pass
    try:
        kind = jax.devices()[0].device_kind.lower()
        if "v7" in kind:
            return 2
    except Exception:
        pass
    return 1


def _vmem_capacity_bytes():
    try:
        info = pltpu.get_tpu_info()
        for attr in ("vmem_capacity_bytes", "vmem_size_bytes", "vmem_bytes"):
            v = getattr(info, attr, None)
            if v:
                return int(v)
    except Exception:
        pass
    return 64 * 1024 * 1024   # conservative: v7x per-TensorCore VMEM


def _rnn_kernel(drive_ref, w_rec_t_ref, w_out_row_ref, b_out_ref, out_ref,
                x_scratch, r_scratch, *, alpha, unroll):
    """One grid step = one (batch tile, time chunk).

    drive_ref    : (T_TILE, B_TILE, N_pad) bf16  alpha*(u@W_in.T + b_rec + std*noise)
    w_rec_t_ref  : (N_pad, N_pad) bf16           W_rec.T, zero padded
    w_out_row_ref: (1, N_pad) f32                W_out.T, zero padded
    b_out_ref    : (1, 1) f32
    out_ref      : (1, T_TILE, B_TILE) f32       per-chunk readout slab
    x_scratch    : (B_TILE, N_pad) f32           hidden state, persists across time chunks
    r_scratch    : (T_TILE, B_TILE, N_pad) bf16  firing rates for the chunk readout
    """
    t_tile = r_scratch.shape[0]
    f32 = jnp.float32

    # Hidden state starts at zero at the first time chunk of every batch tile
    # (x0 is None in the reference module).  Scratch is private per TensorCore,
    # so this is safe when the batch axis is megacore-sharded.
    @pl.when(pl.program_id(1) == 0)
    def _init():
        x_scratch[...] = jnp.zeros(x_scratch.shape, x_scratch.dtype)

    # Loop-invariant operand, hoisted out of the serial time loop.
    w_rec_t = w_rec_t_ref[...]                       # (N, N) bf16 (MXU input dtype)

    def body(j, x):
        base = pl.multiple_of(j * unroll, unroll)
        for s in range(unroll):                      # manual unroll
            t = base + s
            r = jnp.tanh(x)                          # f32, EUP
            r_bf = r.astype(jnp.bfloat16)
            r_scratch[t] = r_bf                      # saved for the chunk readout
            # bf16 x bf16 -> f32 accumulation on the MXU.
            rec = jnp.dot(r_bf, w_rec_t, preferred_element_type=f32)
            # x_{t+1} = (1 - alpha) x_t + alpha (r @ W_rec.T) + drive_t
            x = (1.0 - alpha) * x + alpha * rec + drive_ref[t].astype(f32)
        return x

    # x carried in vector registers (no per-step VMEM round trip); written back
    # once per chunk so it survives to the next time chunk.
    x_final = lax.fori_loop(0, t_tile // unroll, body, x_scratch[...])
    x_scratch[...] = x_final

    # ---- Chunk-level readout (off the per-step serial path) ----------------
    # z[t, b] = sum_n r[t, b, n] * W_out[n] + b_out
    z_tb = jnp.sum(r_scratch[...] * w_out_row_ref[...][None], axis=-1)  # (T, B) f32
    out_ref[0] = z_tb + b_out_ref[...]


def firing_rate_rnn_forward(u, noise, W_rec, W_in, b_rec, W_out, b_out,
                            tau=10.0, dt=1.0, noise_std=0.01, return_all=True):
    """Pallas forward of the FiringRateRNN.

    u     : (batch, T, input_dim)
    noise : (T, batch, N) pre-drawn standard normals (torch.randn_like equiv.)
    Returns (batch, T) if return_all else (batch, 1), matching the module.
    """
    batch, T, input_dim = u.shape
    N = W_rec.shape[0]
    alpha = float(dt) / float(tau)
    f32 = jnp.float32
    bf16 = jnp.bfloat16

    # ---- Generation-aware tiling --------------------------------------------
    n_pad = _round_up(N, 128)                 # lane dim
    SUB = 16                                  # bf16-native sublane granularity
    ncores = _tensorcores_per_chip()
    b_pad0 = _round_up(batch, SUB)
    if ncores >= 2 and b_pad0 > SUB:
        # Split the batch only when the chip has 2 TensorCores (v7x); on
        # single-TC chips a split just runs the serial recurrence twice.
        b_tile = _round_up(_cdiv(b_pad0, 2), SUB)
    else:
        b_tile = b_pad0
    n_btiles = _cdiv(b_pad0, b_tile)
    b_pad = n_btiles * b_tile

    vmem_cap = _vmem_capacity_bytes()
    vmem_limit = min(96 * 1024 * 1024, max((vmem_cap * 3) // 4, 48 * 1024 * 1024))
    budget = int(vmem_limit * 0.7)            # headroom for compiler temps

    def chunk_vmem(tt):
        drive = 2 * tt * b_tile * n_pad * 2   # double-buffered bf16 drive block
        r_scr = tt * b_tile * n_pad * 2       # bf16 firing-rate scratch
        tmp = tt * b_tile * n_pad * 4         # f32 readout temp (worst case)
        w_rec = 2 * n_pad * n_pad * 2         # W_rec.T (conservatively double-buffered)
        x_scr = b_tile * n_pad * 4
        out_b = 2 * tt * b_tile * 4
        return drive + r_scr + tmp + w_rec + x_scr + out_b + 4 * n_pad * 4 + (1 << 16)

    max_t = 128
    for cand in (512, 384, 256, 128):         # largest chunk that fits the VMEM budget
        if chunk_vmem(cand) <= budget:
            max_t = cand
            break
    # Balanced time chunks: no near-empty tail chunk for unlucky T.
    n_tchunks = max(1, _cdiv(T, max_t))
    t_tile = _round_up(_cdiv(T, n_tchunks), 8)
    t_pad = n_tchunks * t_tile

    # Keep the register-carried hidden state within vreg budget under the unroll.
    unroll = 4 if b_tile * n_pad <= 8 * 1024 else 2
    assert t_tile % unroll == 0

    # ---- Host-side prep ------------------------------------------------------
    # Fold everything that is independent of the recurrent state into one
    # streamed bf16 "drive" array; zero padding is self-consistent (padded
    # hidden units / batch rows / time steps stay benign and are sliced off).
    u_f = jnp.asarray(u, f32)
    noise_f = jnp.asarray(noise, f32)                                  # (T, batch, N)
    uproj = jnp.einsum("bti,ni->tbn", u_f, jnp.asarray(W_in, f32))     # (T, batch, N)
    drive = alpha * (uproj + jnp.asarray(b_rec, f32)[None, None, :]
                     + float(noise_std) * noise_f)
    drive_p = jnp.zeros((t_pad, b_pad, n_pad), bf16).at[:T, :batch, :N].set(
        drive.astype(bf16))
    w_rec_t = jnp.zeros((n_pad, n_pad), bf16).at[:N, :N].set(
        jnp.asarray(W_rec, f32).T.astype(bf16))
    w_out_row = jnp.zeros((1, n_pad), f32).at[0, :N].set(jnp.asarray(W_out, f32)[:, 0])
    b_out_p = jnp.asarray(b_out, f32).reshape(1, 1)

    kernel = functools.partial(_rnn_kernel, alpha=alpha, unroll=unroll)

    out = pl.pallas_call(
        kernel,
        out_shape=jax.ShapeDtypeStruct((n_btiles, t_pad, b_tile), f32),
        grid_spec=pltpu.PrefetchScalarGridSpec(
            num_scalar_prefetch=0,
            grid=(n_btiles, n_tchunks),           # (parallel batch, serial time)
            in_specs=[
                pl.BlockSpec((t_tile, b_tile, n_pad), lambda bi, ti: (ti, bi, 0)),
                pl.BlockSpec((n_pad, n_pad), lambda bi, ti: (0, 0)),
                pl.BlockSpec((1, n_pad), lambda bi, ti: (0, 0)),
                pl.BlockSpec((1, 1), lambda bi, ti: (0, 0)),
            ],
            out_specs=pl.BlockSpec((1, t_tile, b_tile), lambda bi, ti: (bi, ti, 0)),
            scratch_shapes=[
                pltpu.VMEM((b_tile, n_pad), f32),            # hidden state x
                pltpu.VMEM((t_tile, b_tile, n_pad), bf16),   # firing rates
            ],
        ),
        compiler_params=pltpu.CompilerParams(
            dimension_semantics=("parallel", "arbitrary"),
            vmem_limit_bytes=int(vmem_limit),
        ),
    )(drive_p, w_rec_t, w_out_row, b_out_p)

    # (n_btiles, t_pad, b_tile) -> (b_pad, t_pad) -> slice off padding.
    z_all = jnp.transpose(out, (0, 2, 1)).reshape(b_pad, t_pad)[:batch, :T]
    if return_all:
        return z_all
    return z_all[:, -1:]


def _reference_forward(u, noise, W_rec, W_in, b_rec, W_out, b_out,
                       tau, dt, noise_std):
    """Pure-JAX replica of the PyTorch loop (same pre-drawn noise), f32."""
    batch, T, _ = u.shape
    N = W_rec.shape[0]
    x = jnp.zeros((batch, N), jnp.float32)
    outs = []
    for t in range(T):
        r = jnp.tanh(x)
        z = r @ W_out[:, 0] + b_out[0]
        outs.append(z)
        dx = (-x + r @ W_rec.T + u[:, t, :] @ W_in.T + b_rec
              + noise[t] * noise_std) * (dt / tau)
        x = x + dx
    return jnp.stack(outs, axis=1)


if __name__ == "__main__":
    batch, T, input_dim, N = 2, 8, 2, 32
    tau, dt, noise_std = 10.0, 1.0, 0.01

    key = jax.random.PRNGKey(0)
    k = jax.random.split(key, 6)

    # Deterministic parameter init following the module's __init__ shapes.
    W_rec = jax.random.normal(k[0], (N, N), jnp.float32) / jnp.sqrt(N)
    W_in = jax.random.uniform(k[1], (N, input_dim), jnp.float32, -1.0, 1.0)
    b_rec = jnp.zeros((N,), jnp.float32)
    # __init__ zeros these; use small deterministic randoms so the readout is non-trivial.
    W_out = 0.1 * jax.random.normal(k[2], (N, 1), jnp.float32)
    b_out = 0.1 * jax.random.normal(k[3], (1,), jnp.float32)

    u = jax.random.normal(k[4], (batch, T, input_dim), jnp.float32)
    # torch.randn_like noise is drawn outside the kernel (deterministically) and passed in.
    noise = jax.random.normal(k[5], (T, batch, N), jnp.float32)

    z = firing_rate_rnn_forward(u, noise, W_rec, W_in, b_rec, W_out, b_out,
                                tau=tau, dt=dt, noise_std=noise_std, return_all=True)
    z = jax.block_until_ready(z)

    z_ref = _reference_forward(u, noise, W_rec, W_in, b_rec, W_out, b_out,
                               tau, dt, noise_std)

    assert z.shape == (batch, T), z.shape
    err = float(jnp.max(jnp.abs(z - z_ref)))
    # bf16 weights / rates / drive (with f32 accumulation and f32 state update)
    # => loosened tolerance vs the pure-f32 reference.
    assert err < 3e-2, f"max abs error {err}"

    z_last = firing_rate_rnn_forward(u, noise, W_rec, W_in, b_rec, W_out, b_out,
                                     tau=tau, dt=dt, noise_std=noise_std,
                                     return_all=False)
    z_last = jax.block_until_ready(z_last)
    assert z_last.shape == (batch, 1), z_last.shape
    assert float(jnp.max(jnp.abs(z_last - z_ref[:, -1:]))) < 3e-2

    print("KERNEL_OK")
</pallas_src>

<mosaic_0001>
module attributes {stable_mosaic.version = 11 : i64} {
  func.func @_rnn_kernel(%arg0: i32, %arg1: i32, %arg2: memref<8x16x128xbf16, #tpu.memory_space<vmem>>, %arg3: memref<128x128xbf16, #tpu.memory_space<vmem>>, %arg4: memref<1x128xf32, #tpu.memory_space<vmem>>, %arg5: memref<1x1xf32, #tpu.memory_space<vmem>>, %arg6: memref<1x8x16xf32, #tpu.memory_space<vmem>>, %arg7: memref<16x128xf32, #tpu.memory_space<vmem>>, %arg8: memref<8x16x128xbf16, #tpu.memory_space<vmem>>) attributes {dimension_semantics = [#tpu.dimension_semantics<parallel>, #tpu.dimension_semantics<arbitrary>], iteration_bounds = array<i64: 1, 1>, scalar_prefetch = 0 : i64, scratch_operands = 2 : i64, tpu.core_type = #tpu.core_type<tc>, window_params = [{transform_indices = @transform_0, window_bounds = array<i64: 8, 16, 128>}, {pipeline_mode = #tpu.pipeline_mode<synchronous>, transform_indices = @transform_1, window_bounds = array<i64: 128, 128>}, {pipeline_mode = #tpu.pipeline_mode<synchronous>, transform_indices = @transform_2, window_bounds = array<i64: 1, 128>}, {pipeline_mode = #tpu.pipeline_mode<synchronous>, transform_indices = @transform_3, window_bounds = array<i64: 1, 1>}, {transform_indices = @transform_4, window_bounds = array<i64: 1, 8, 16>}]} {
    %c0_i32 = arith.constant 0 : i32
    %0 = arith.cmpi eq, %arg1, %c0_i32 : i32
    %1 = arith.extui %0 : i1 to i32
    %c0_i32_0 = arith.constant 0 : i32
    %2 = arith.cmpi ne, %1, %c0_i32_0 : i32
    scf.if %2 {
      %cst_18 = arith.constant 0.000000e+00 : f32
      %21 = vector.broadcast %cst_18 : f32 to vector<16x128xf32>
      %c0_19 = arith.constant 0 : index
      %c0_20 = arith.constant 0 : index
      %22 = vector.load %arg7[%c0_19, %c0_20] : memref<16x128xf32, #tpu.memory_space<vmem>>, vector<16x128xf32>
      tpu.vector_store %arg7[%c0_19, %c0_20], %21 {strides = array<i32>} : memref<16x128xf32, #tpu.memory_space<vmem>>, vector<16x128xf32>,
    } else {
    }
    %c0 = arith.constant 0 : index
    %c0_1 = arith.constant 0 : index
    %3 = vector.load %arg3[%c0, %c0_1] : memref<128x128xbf16, #tpu.memory_space<vmem>>, vector<128x128xbf16>
    %c0_2 = arith.constant 0 : index
    %c0_3 = arith.constant 0 : index
    %4 = vector.load %arg7[%c0_2, %c0_3] : memref<16x128xf32, #tpu.memory_space<vmem>>, vector<16x128xf32>
    %c0_i32_4 = arith.constant 0 : i32
    %c2_i32 = arith.constant 2 : i32
    %5 = arith.addi %c0_i32_4, %c2_i32 : i32
    %c1_i32 = arith.constant 1 : i32
    %6 = scf.for %arg9 = %c0_i32_4 to %5 step %c1_i32 iter_args(%arg10 = %4) -> (vector<16x128xf32>)  : i32 {
      %c4_i32 = arith.constant 4 : i32
      %21 = arith.muli %arg9, %c4_i32 : i32
      %22 = tpu.assume_multiple %21, 4 : i32
      %c0_i32_18 = arith.constant 0 : i32
      %23 = arith.addi %22, %c0_i32_18 : i32
      %24 = math.tanh %arg10 : vector<16x128xf32>
      %25 = arith.truncf %24 : vector<16x128xf32> to vector<16x128xbf16>
      %26 = arith.index_cast %23 : i32 to index
      %c0_19 = arith.constant 0 : index
      %c0_20 = arith.constant 0 : index
      %27 = vector.load %arg8[%26, %c0_19, %c0_20] : memref<8x16x128xbf16, #tpu.memory_space<vmem>>, vector<1x16x128xbf16>
      %28 = vector.shape_cast %27 : vector<1x16x128xbf16> to vector<16x128xbf16>
      %29 = vector.shape_cast %25 : vector<16x128xbf16> to vector<1x16x128xbf16>
      tpu.vector_store %arg8[%26, %c0_19, %c0_20], %29 {strides = array<i32>} : memref<8x16x128xbf16, #tpu.memory_space<vmem>>, vector<1x16x128xbf16>,
      %cst_21 = arith.constant dense<0.000000e+00> : vector<16x128xf32>
      %30 = tpu.matmul %25, %3, %cst_21 {dimension_numbers = #tpu.dot_dimension_numbers<[1], [0], [0], [1], [0, 0, 1, 1], [], []>} : vector<16x128xbf16>, vector<128x128xbf16>, vector<16x128xf32> -> vector<16x128xf32>
      %cst_22 = arith.constant 0.899999976 : f32
      %31 = vector.broadcast %cst_22 : f32 to vector<16x128xf32>
      %32 = arith.mulf %31, %arg10 : vector<16x128xf32>
      %cst_23 = arith.constant 1.000000e-01 : f32
      %33 = vector.broadcast %cst_23 : f32 to vector<16x128xf32>
      %34 = arith.mulf %33, %30 : vector<16x128xf32>
      %35 = arith.addf %32, %34 : vector<16x128xf32>
      %36 = arith.index_cast %23 : i32 to index
      %c0_24 = arith.constant 0 : index
      %c0_25 = arith.constant 0 : index
      %37 = vector.load %arg2[%36, %c0_24, %c0_25] : memref<8x16x128xbf16, #tpu.memory_space<vmem>>, vector<1x16x128xbf16>
      %38 = vector.shape_cast %37 : vector<1x16x128xbf16> to vector<16x128xbf16>
      %39 = arith.extf %38 : vector<16x128xbf16> to vector<16x128xf32>
      %40 = arith.addf %35, %39 : vector<16x128xf32>
      %c1_i32_26 = arith.constant 1 : i32
      %41 = arith.addi %22, %c1_i32_26 : i32
      %42 = math.tanh %40 : vector<16x128xf32>
      %43 = arith.truncf %42 : vector<16x128xf32> to vector<16x128xbf16>
      %44 = arith.index_cast %41 : i32 to index
      %c0_27 = arith.constant 0 : index
      %c0_28 = arith.constant 0 : index
      %45 = vector.load %arg8[%44, %c0_27, %c0_28] : memref<8x16x128xbf16, #tpu.memory_space<vmem>>, vector<1x16x128xbf16>
      %46 = vector.shape_cast %45 : vector<1x16x128xbf16> to vector<16x128xbf16>
      %47 = vector.shape_cast %43 : vector<16x128xbf16> to vector<1x16x128xbf16>
      tpu.vector_store %arg8[%44, %c0_27, %c0_28], %47 {strides = array<i32>} : memref<8x16x128xbf16, #tpu.memory_space<vmem>>, vector<1x16x128xbf16>,
      %cst_29 = arith.constant dense<0.000000e+00> : vector<16x128xf32>
      %48 = tpu.matmul %43, %3, %cst_29 {dimension_numbers = #tpu.dot_dimension_numbers<[1], [0], [0], [1], [0, 0, 1, 1], [], []>} : vector<16x128xbf16>, vector<128x128xbf16>, vector<16x128xf32> -> vector<16x128xf32>
      %cst_30 = arith.constant 0.899999976 : f32
      %49 = vector.broadcast %cst_30 : f32 to vector<16x128xf32>
      %50 = arith.mulf %49, %40 : vector<16x128xf32>
      %cst_31 = arith.constant 1.000000e-01 : f32
      %51 = vector.broadcast %cst_31 : f32 to vector<16x128xf32>
      %52 = arith.mulf %51, %48 : vector<16x128xf32>
      %53 = arith.addf %50, %52 : vector<16x128xf32>
      %54 = arith.index_cast %41 : i32 to index
      %c0_32 = arith.constant 0 : index
      %c0_33 = arith.constant 0 : index
      %55 = vector.load %arg2[%54, %c0_32, %c0_33] : memref<8x16x128xbf16, #tpu.memory_space<vmem>>, vector<1x16x128xbf16>
      %56 = vector.shape_cast %55 : vector<1x16x128xbf16> to vector<16x128xbf16>
      %57 = arith.extf %56 : vector<16x128xbf16> to vector<16x128xf32>
      %58 = arith.addf %53, %57 : vector<16x128xf32>
      %c2_i32_34 = arith.constant 2 : i32
      %59 = arith.addi %22, %c2_i32_34 : i32
      %60 = math.tanh %58 : vector<16x128xf32>
      %61 = arith.truncf %60 : vector<16x128xf32> to vector<16x128xbf16>
      %62 = arith.index_cast %59 : i32 to index
      %c0_35 = arith.constant 0 : index
      %c0_36 = arith.constant 0 : index
      %63 = vector.load %arg8[%62, %c0_35, %c0_36] : memref<8x16x128xbf16, #tpu.memory_space<vmem>>, vector<1x16x128xbf16>
      %64 = vector.shape_cast %63 : vector<1x16x128xbf16> to vector<16x128xbf16>
      %65 = vector.shape_cast %61 : vector<16x128xbf16> to vector<1x16x128xbf16>
      tpu.vector_store %arg8[%62, %c0_35, %c0_36], %65 {strides = array<i32>} : memref<8x16x128xbf16, #tpu.memory_space<vmem>>, vector<1x16x128xbf16>,
      %cst_37 = arith.constant dense<0.000000e+00> : vector<16x128xf32>
      %66 = tpu.matmul %61, %3, %cst_37 {dimension_numbers = #tpu.dot_dimension_numbers<[1], [0], [0], [1], [0, 0, 1, 1], [], []>} : vector<16x128xbf16>, vector<128x128xbf16>, vector<16x128xf32> -> vector<16x128xf32>
      %cst_38 = arith.constant 0.899999976 : f32
      %67 = vector.broadcast %cst_38 : f32 to vector<16x128xf32>
      %68 = arith.mulf %67, %58 : vector<16x128xf32>
      %cst_39 = arith.constant 1.000000e-01 : f32
      %69 = vector.broadcast %cst_39 : f32 to vector<16x128xf32>
      %70 = arith.mulf %69, %66 : vector<16x128xf32>
      %71 = arith.addf %68, %70 : vector<16x128xf32>
      %72 = arith.index_cast %59 : i32 to index
      %c0_40 = arith.constant 0 : index
      %c0_41 = arith.constant 0 : index
      %73 = vector.load %arg2[%72, %c0_40, %c0_41] : memref<8x16x128xbf16, #tpu.memory_space<vmem>>, vector<1x16x128xbf16>
      %74 = vector.shape_cast %73 : vector<1x16x128xbf16> to vector<16x128xbf16>
      %75 = arith.extf %74 : vector<16x128xbf16> to vector<16x128xf32>
      %76 = arith.addf %71, %75 : vector<16x128xf32>
      %c3_i32 = arith.constant 3 : i32
      %77 = arith.addi %22, %c3_i32 : i32
      %78 = math.tanh %76 : vector<16x128xf32>
      %79 = arith.truncf %78 : vector<16x128xf32> to vector<16x128xbf16>
      %80 = arith.index_cast %77 : i32 to index
      %c0_42 = arith.constant 0 : index
      %c0_43 = arith.constant 0 : index
      %81 = vector.load %arg8[%80, %c0_42, %c0_43] : memref<8x16x128xbf16, #tpu.memory_space<vmem>>, vector<1x16x128xbf16>
      %82 = vector.shape_cast %81 : vector<1x16x128xbf16> to vector<16x128xbf16>
      %83 = vector.shape_cast %79 : vector<16x128xbf16> to vector<1x16x128xbf16>
      tpu.vector_store %arg8[%80, %c0_42, %c0_43], %83 {strides = array<i32>} : memref<8x16x128xbf16, #tpu.memory_space<vmem>>, vector<1x16x128xbf16>,
      %cst_44 = arith.constant dense<0.000000e+00> : vector<16x128xf32>
      %84 = tpu.matmul %79, %3, %cst_44 {dimension_numbers = #tpu.dot_dimension_numbers<[1], [0], [0], [1], [0, 0, 1, 1], [], []>} : vector<16x128xbf16>, vector<128x128xbf16>, vector<16x128xf32> -> vector<16x128xf32>
      %cst_45 = arith.constant 0.899999976 : f32
      %85 = vector.broadcast %cst_45 : f32 to vector<16x128xf32>
      %86 = arith.mulf %85, %76 : vector<16x128xf32>
      %cst_46 = arith.constant 1.000000e-01 : f32
      %87 = vector.broadcast %cst_46 : f32 to vector<16x128xf32>
      %88 = arith.mulf %87, %84 : vector<16x128xf32>
      %89 = arith.addf %86, %88 : vector<16x128xf32>
      %90 = arith.index_cast %77 : i32 to index
      %c0_47 = arith.constant 0 : index
      %c0_48 = arith.constant 0 : index
      %91 = vector.load %arg2[%90, %c0_47, %c0_48] : memref<8x16x128xbf16, #tpu.memory_space<vmem>>, vector<1x16x128xbf16>
      %92 = vector.shape_cast %91 : vector<1x16x128xbf16> to vector<16x128xbf16>
      %93 = arith.extf %92 : vector<16x128xbf16> to vector<16x128xf32>
      %94 = arith.addf %89, %93 : vector<16x128xf32>
      scf.yield %94 : vector<16x128xf32>
    }
    %c2_i32_5 = arith.constant 2 : i32
    %c0_6 = arith.constant 0 : index
    %c0_7 = arith.constant 0 : index
    %7 = vector.load %arg7[%c0_6, %c0_7] : memref<16x128xf32, #tpu.memory_space<vmem>>, vector<16x128xf32>
    tpu.vector_store %arg7[%c0_6, %c0_7], %6 {strides = array<i32>} : memref<16x128xf32, #tpu.memory_space<vmem>>, vector<16x128xf32>,
    %c0_8 = arith.constant 0 : index
    %c0_9 = arith.constant 0 : index
    %c0_10 = arith.constant 0 : index
    %8 = vector.load %arg8[%c0_8, %c0_9, %c0_10] : memref<8x16x128xbf16, #tpu.memory_space<vmem>>, vector<8x16x128xbf16>
    %c0_11 = arith.constant 0 : index
    %c0_12 = arith.constant 0 : index
    %9 = vector.load %arg4[%c0_11, %c0_12] : memref<1x128xf32, #tpu.memory_space<vmem>>, vector<1x128xf32>
    %10 = vector.shape_cast %9 : vector<1x128xf32> to vector<1x1x128xf32>
    %11 = arith.extf %8 : vector<8x16x128xbf16> to vector<8x16x128xf32>
    %12 = vector.broadcast %10 : vector<1x1x128xf32> to vector<8x16x128xf32>
    %13 = arith.mulf %11, %12 : vector<8x16x128xf32>
    %cst = arith.constant dense<0.000000e+00> : vector<8x16xf32>
    %14 = vector.multi_reduction <add>, %13, %cst [2] : vector<8x16x128xf32> to vector<8x16xf32>
    %c0_13 = arith.constant 0 : index
    %c0_14 = arith.constant 0 : index
    %15 = vector.load %arg5[%c0_13, %c0_14] : memref<1x1xf32, #tpu.memory_space<vmem>>, vector<1x1xf32>
    %16 = vector.broadcast %15 : vector<1x1xf32> to vector<8x16xf32>
    %17 = arith.addf %14, %16 : vector<8x16xf32>
    %c0_15 = arith.constant 0 : index
    %c0_16 = arith.constant 0 : index
    %c0_17 = arith.constant 0 : index
    %18 = vector.load %arg6[%c0_15, %c0_16, %c0_17] : memref<1x8x16xf32, #tpu.memory_space<vmem>>, vector<1x8x16xf32>
    %19 = vector.shape_cast %18 : vector<1x8x16xf32> to vector<8x16xf32>
    %20 = vector.shape_cast %17 : vector<8x16xf32> to vector<1x8x16xf32>
    tpu.vector_store %arg6[%c0_15, %c0_16, %c0_17], %20 {strides = array<i32>} : memref<1x8x16xf32, #tpu.memory_space<vmem>>, vector<1x8x16xf32>,
    return
  }
  func.func @transform_0(%arg0: i32, %arg1: i32) -> (i32, i32, i32) {
    %c0_i32 = arith.constant 0 : i32
    %c0_i32_0 = arith.constant 0 : i32
    return %arg1, %arg0, %c0_i32 : i32, i32, i32
  }
  func.func @transform_1(%arg0: i32, %arg1: i32) -> (i32, i32) {
    %c0_i32 = arith.constant 0 : i32
    %c0_i32_0 = arith.constant 0 : i32
    %c0_i32_1 = arith.constant 0 : i32
    return %c0_i32, %c0_i32_0 : i32, i32
  }
  func.func @transform_2(%arg0: i32, %arg1: i32) -> (i32, i32) {
    %c0_i32 = arith.constant 0 : i32
    %c0_i32_0 = arith.constant 0 : i32
    %c0_i32_1 = arith.constant 0 : i32
    return %c0_i32, %c0_i32_0 : i32, i32
  }
  func.func @transform_3(%arg0: i32, %arg1: i32) -> (i32, i32) {
    %c0_i32 = arith.constant 0 : i32
    %c0_i32_0 = arith.constant 0 : i32
    %c0_i32_1 = arith.constant 0 : i32
    return %c0_i32, %c0_i32_0 : i32, i32
  }
  func.func @transform_4(%arg0: i32, %arg1: i32) -> (i32, i32, i32) {
    %c0_i32 = arith.constant 0 : i32
    %c0_i32_0 = arith.constant 0 : i32
    return %arg0, %arg1, %c0_i32 : i32, i32, i32
  }
}

</mosaic_0001>

<bundles_post_ra>
// kernel: tpu_custom_call.1
= control target key start
LH: loop header
LB: loop body
LE: loop exit
PB: predicated region body
PF: predicated region fallthrough
CT: control target
= control target key end

     0   :  { %s1234_s0 = inlined_call_operand.hbm [shape: bf16[8,16,128], index: 0, kind: input, shape index: {}]   ;;  %s1235_s1 = inlined_call_operand.hbm [shape: bf16[128,128], index: 1, kind: input, shape index: {}]   ;;  %s1236_s2 = inlined_call_operand.vmem [shape: f32[1,128], index: 2, kind: input, shape index: {}]   ;;  %s1237_s3 = inlined_call_operand.<no memory space> [shape: f32[1,1], index: 3, kind: input, shape index: {}]   ;;  %s1238_s4 = inlined_call_operand.hbm [shape: f32[1,8,16], index: 4, kind: output, shape index: {}]  }
   0x1   :  { %v9_v0 = vstv %s1237_s3 }
   0x2   :  { %10 = vst [vmem:[#allocation4] sm:$0x1] %v9_v0 }
   0x3   :  { %11 = vsyncpa [#allocation6], 0 }
   0x4   :  { %12 = vsyncpa [#allocation9], 0 }
   0x5   :  { %13 = vsyncpa [#allocation7], 0  ;;  %s977_s17 = smov [#allocation5]   ;;  %s881_s21 = scalar_lea.hbm %s1234_s0, 1024 }
   0x6   :  { %s19_s18 = sshll.u32 %s977_s17, 4  ;;  %p882_p0 = scmp.ne.s32.totalorder %s1234_s0, %s881_s21  ;;  %s20_s18 = int_to_ptr.vmem [resolvable:$true] %s19_s18 }
   0x7   :  { %p885_p1 = scmp.lt.u32.totalorder %s881_s21, %s1234_s0 }
   0x9   :  { %p887_p2 = pnand %p885_p1, %p882_p0 }
   0xb   :  { %890 = shalt.err (!%p887_p2)
}
   0xc   :  { %s891_s3 = scalar_lea.vmem %s20_s18, 1024  ;;  %p896_p4 = scmp.lt.s32.totalorder %s20_s18, %s20_s18 }
   0xd   :  { %p892_p3 = scmp.ne.s32.totalorder %s20_s18, %s891_s3  ;;  %p897_p5 = scmp.lt.s32.totalorder %s891_s3, %s891_s3 }
   0xf   :  { %p898_p6 = por %p897_p5, %p896_p4 }
  0x11   :  { %p899_p7 = pnand %p898_p6, %p892_p3 }
  0x13   :  { %902 = shalt.err (!%p899_p7)
}
  0x14   :  { %s978_s26 = smov 64   ;;  %s979_s27 = smov 4  }
  0x15   :  { %25 = dma.hbm_to_vmem [thread:$0]  %s1234_s0, 1024, %s20_s18, [#allocation6], %s978_s26, %s978_s26, %s979_s27  }
  0x16   :  { %s980_s30 = smov [#allocation8]   ;;  %s903_s8 = scalar_lea.hbm %s1235_s1, 1024 }
  0x17   :  { %s31_s5 = sshll.u32 %s980_s30, 4  ;;  %p904_p8 = scmp.ne.s32.totalorder %s1235_s1, %s903_s8  ;;  %s32_s5 = int_to_ptr.vmem [resolvable:$true] %s31_s5 }
  0x18   :  { %p907_p9 = scmp.lt.u32.totalorder %s903_s8, %s1235_s1 }
  0x1a   :  { %p909_p10 = pnand %p907_p9, %p904_p8 }
  0x1c   :  { %912 = shalt.err (!%p909_p10)
}
  0x1d   :  { %s913_s13 = scalar_lea.vmem %s32_s5, 1024  ;;  %p918_p12 = scmp.lt.s32.totalorder %s32_s5, %s32_s5 }
  0x1e   :  { %p914_p11 = scmp.ne.s32.totalorder %s32_s5, %s913_s13  ;;  %p919_p13 = scmp.lt.s32.totalorder %s913_s13, %s913_s13 }
  0x20   :  { %p920_p0 = por %p919_p13, %p918_p12 }
  0x22   :  { %p921_p1 = pnand %p920_p0, %p914_p11 }
  0x24   :  { %924 = shalt.err (!%p921_p1)
}
  0x25   :  { %37 = dma.hbm_to_vmem [thread:$0]  %s1235_s1, 1024, %s32_s5, [#allocation9], %s978_s26, %s978_s26, %s979_s27  }
  0x26   :  { %959 = dma.done.wait [#allocation6], 1024  }
  0x27   :  { %960 = vsyncadd [#allocation6], 4294966272 }
  0x28   :  { %961 = dma.done.wait [#allocation9], 1024  }
  0x29   :  { %962 = vsyncadd [#allocation9], 4294966272  ;;  %v1037_v1 = vld [vmem:[#allocation8] sm:$0xf]  ;;  %v1039_v2 = vld [vmem:[#allocation8 + $0x4] sm:$0xf] }
  0x2a   :  { %v1041_v3 = vld [vmem:[#allocation8 + $0x8] sm:$0xf]  ;;  %v1043_v4 = vld [vmem:[#allocation8 + $0xc] sm:$0xf]  ;;  %v1045_v5 = vld [vmem:[#allocation8 + $0x10] sm:$0xf] }
  0x2b   :  { %v1047_v6 = vld [vmem:[#allocation8 + $0x14] sm:$0xf]  ;;  %v1049_v7 = vld [vmem:[#allocation8 + $0x18] sm:$0xf]  ;;  %v1051_v8 = vld [vmem:[#allocation8 + $0x1c] sm:$0xf] }
  0x2c   :  { %v1053_v9 = vld [vmem:[#allocation8 + $0x20] sm:$0xf]  ;;  %v1055_v10 = vld [vmem:[#allocation8 + $0x24] sm:$0xf]  ;;  %v1057_v11 = vld [vmem:[#allocation8 + $0x28] sm:$0xf] }
  0x2d   :  { %v1059_v12 = vld [vmem:[#allocation8 + $0x2c] sm:$0xf]  ;;  %v1061_v13 = vld [vmem:[#allocation8 + $0x30] sm:$0xf]  ;;  %v1063_v14 = vld [vmem:[#allocation8 + $0x34] sm:$0xf] }
  0x2e   :  { %v1065_v15 = vld [vmem:[#allocation8 + $0x38] sm:$0xf]  ;;  %v1067_v16 = vld [vmem:[#allocation8 + $0x3c] sm:$0xf]  ;;  %v1069_v17 = vmov 0.0   ;;  %v1071_v18 = vmov 0.0  }
  0x2f   :  { %s1073_s1 = smov 0  }
  0x30 LB: > { %v1086_v19 = vcombine.low %v1037_v1, %v1039_v2  ;;  %v981_v20 = vmov 0.0   ;;  %v1092_v21 = vcombine.low %v1041_v3, %v1043_v4  ;;  %vm982_vm0 = vmmov 0   ;;  %s687_s15 = sshll.u32 %s975_s1, 5  ;;  %s78_s1 = sadd.s32 1, %s975_s1   ;;  %s975_s1 = sphi %s1073_s1, %s78_s1   ;;  %v971_v18 = vphi %v1071_v18, %v379_v18   ;;  %v967_v17 = vphi %v1069_v17, %v380_v17  }
  0x31   : > { %751 = vmatprep.subr.bf16.mxu0 %v981_v20  ;;  %771 = vmatprep.subr.bf16.mxu1 %v981_v20  ;;  %864 = vtanh.f32 %v971_v18  ;;  %v1107_v22 = vcombine.low %v1045_v5, %v1047_v6  ;;  %v1115_v23 = vcombine.low %v1049_v7, %v1051_v8  ;;  %v1123_v25 = vcombine.low %v1053_v9, %v1055_v10  ;;  %s1136_s16 = scalar_lea.vmem [#allocation3], %s687_s15  ;;  %s1176_s17 = scalar_lea.vmem [#allocation5], %s687_s15 }
  0x32   : > { %752 = vmatpush3.bf16.msra.mxu0 %v1086_v19  ;;  %767 = vmatprep.mubr.msk.bf16.mxu0 %vm982_vm0, %v981_v20  ;;  %866 = vtanh.f32 %v967_v17  ;;  %v1132_v28 = vcombine.low %v1057_v11, %v1059_v12  ;;  %v1145_v29 = vcombine.low %v1061_v13, %v1063_v14  ;;  %v661_v30 = vcombine.low %v1065_v15, %v1067_v16  ;;  %v697_v31 = vld [vmem:[%s1176_s17] sm:$0xff]   ;;  %v712_v49 = vld [vmem:[%s1176_s17 + $0x8] sm:$0xff]   ;;  %p75_p2 = scmp.ge.s32.totalorder %s78_s1, 2  }
  0x33   : > { %753 = vmatprep.subr.bf16.mxu0 %v981_v20  ;;  %772 = vmatpush3.bf16.msra.mxu1 %v1086_v19  ;;  %v177_v32 = vmul.f32 0.9, %v971_v18  ;;  %v698_v35 = vunpack.c.l.bf16 %v697_v31  ;;  %v178_v37 = vmul.f32 0.9, %v967_v17  ;;  %v699_v41 = vunpack.c.h.bf16 %v697_v31 }
  0x34   : > { %787 = vmatprep.mubr.msk.bf16.mxu1 %vm982_vm0, %v981_v20  ;;  %773 = vmatprep.subr.bf16.mxu1 %v981_v20  ;;  %v702_v53 = vunpack.c.l.bf16 %v712_v49  ;;  %v703_v59 = vunpack.c.h.bf16 %v712_v49  ;;  %vm515_vm1 = vcmask (%p75_p2), 130112   ;;  %vm580_vm2 = vcmask (%p75_p2), 1041409  }
  0x35   :  { %vm582_vm3 = vcmask (%p75_p2), 1042434   ;;  %vm584_vm4 = vcmask (%p75_p2), 1043459   ;;  %vm586_vm5 = vcmask (%p75_p2), 1044484   ;;  %vm588_vm6 = vcmask (%p75_p2), 1045509  }
  0x36   : > { %754 = vmatpush3.bf16.msra.mxu0 %v1092_v21  ;;  %vm590_vm7 = vcmask (%p75_p2), 1046534   ;;  %vm592_vm8 = vcmask (%p75_p2), 1047559   ;;  %vm595_vm9 = vcmask (%p75_p2), 130048  }
  0x37   : > { %755 = vmatprep.subr.bf16.mxu0 %v981_v20  ;;  %774 = vmatpush3.bf16.msra.mxu1 %v1092_v21 }
  0x38   : > { %775 = vmatprep.subr.bf16.mxu1 %v981_v20 }
  0x3a   : > { %756 = vmatpush3.bf16.msra.mxu0 %v1107_v22 }
  0x3b   : > { %757 = vmatprep.subr.bf16.mxu0 %v981_v20  ;;  %776 = vmatpush3.bf16.msra.mxu1 %v1107_v22  ;;  %v865_v24 = vpop.eup %864 }
  0x3c   : > { %777 = vmatprep.subr.bf16.mxu1 %v981_v20  ;;  %v867_v26 = vpop.eup %866 }
  0x3d   : > { %v84_v27 = vpack.c.bf16 %v867_v26, %v865_v24 }
  0x3e   : > { %758 = vmatpush3.bf16.msra.mxu0 %v1115_v23 }
  0x3f   : > { %759 = vmatprep.subr.bf16.mxu0 %v981_v20  ;;  %778 = vmatpush3.bf16.msra.mxu1 %v1115_v23  ;;  %87 = vst [vmem:[%s1136_s16] sm:$0xff] %v84_v27 }
  0x40   : > { %779 = vmatprep.subr.bf16.mxu1 %v981_v20 }
  0x42   : > { %760 = vmatpush3.bf16.msra.mxu0 %v1123_v25 }
  0x43   : > { %761 = vmatprep.subr.bf16.mxu0 %v981_v20  ;;  %780 = vmatpush3.bf16.msra.mxu1 %v1123_v25 }
  0x44   : > { %781 = vmatprep.subr.bf16.mxu1 %v981_v20 }
  0x46   : > { %762 = vmatpush3.bf16.msra.mxu0 %v1132_v28 }
  0x47   : > { %763 = vmatprep.subr.bf16.mxu0 %v981_v20  ;;  %782 = vmatpush3.bf16.msra.mxu1 %v1132_v28 }
  0x48   : > { %783 = vmatprep.subr.bf16.mxu1 %v981_v20 }
  0x4a   : > { %764 = vmatpush3.bf16.msra.mxu0 %v1145_v29 }
  0x4b   : > { %765 = vmatprep.subr.bf16.mxu0 %v981_v20  ;;  %784 = vmatpush3.bf16.msra.mxu1 %v1145_v29 }
  0x4c   : > { %785 = vmatprep.subr.bf16.mxu1 %v981_v20 }
  0x4e   : > { %766 = vmatpush3.bf16.msra.mxu0 %v661_v30 }
  0x4f   : > { %791 = vmatprep.subr.bf16.mxu0 %v981_v20  ;;  %786 = vmatpush3.bf16.msra.mxu1 %v661_v30 }
  0x50   : > { %811 = vmatprep.subr.bf16.mxu1 %v981_v20 }
  0x51   : > { %768 = vmatmul.mubr.bf16.vlgmr.msra.gmra.mrb[0].mxu0 %v84_v27 }
  0x52   : > { %792 = vmatpush3.bf16.msra.mxu0 %v1086_v19  ;;  %807 = vmatprep.mubr.msk.bf16.mxu0 %vm982_vm0, %v981_v20 }
  0x53   : > { %793 = vmatprep.subr.bf16.mxu0 %v981_v20 }
  0x56   : > { %794 = vmatpush3.bf16.msra.mxu0 %v1092_v21 }
  0x57   : > { %795 = vmatprep.subr.bf16.mxu0 %v981_v20 }
  0x5a   : > { %796 = vmatpush3.bf16.msra.mxu0 %v1107_v22 }
  0x5b   : > { %797 = vmatprep.subr.bf16.mxu0 %v981_v20 }
  0x5e   : > { %798 = vmatpush3.bf16.msra.mxu0 %v1115_v23 }
  0x5f   : > { %799 = vmatprep.subr.bf16.mxu0 %v981_v20 }
  0x62   : > { %800 = vmatpush3.bf16.msra.mxu0 %v1123_v25 }
  0x63   : > { %801 = vmatprep.subr.bf16.mxu0 %v981_v20 }
  0x66   : > { %802 = vmatpush3.bf16.msra.mxu0 %v1132_v28 }
  0x67   : > { %803 = vmatprep.subr.bf16.mxu0 %v981_v20 }
  0x6a   : > { %804 = vmatpush3.bf16.msra.mxu0 %v1145_v29 }
  0x6b   : > { %805 = vmatprep.subr.bf16.mxu0 %v981_v20 }
  0x6e   : > { %806 = vmatpush3.bf16.msra.mxu0 %v661_v30 }
 0x124   : > { %v170_v33 = vpop.f32.mrb[0].mxu0 }
 0x125   : > { %v179_v34 = vmul.f32 0.1, %v170_v33  ;;  %v769_v36 = vpop.f32.mrb[1].mxu0 }
 0x126   : > { %v173_v38 = vpop.f32.mrb[2].mxu0 }
 0x127   : > { %v181_v39 = vadd.f32 %v179_v34, %v177_v32  ;;  %v180_v40 = vmul.f32 0.1, %v173_v38  ;;  %v770_v42 = vpop.f32.mrb[3].mxu0 }
 0x129   : > { %v190_v43 = vadd.f32 %v698_v35, %v181_v39  ;;  %v182_v44 = vadd.f32 %v180_v40, %v178_v37  ;;  %v714_v37 = vld [vmem:[%s1176_s17 + $0x18] sm:$0xff]  }
 0x12b   : > { %v191_v45 = vadd.f32 %v699_v41, %v182_v44  ;;  %868 = vtanh.f32 %v190_v43  ;;  %v240_v51 = vmul.f32 0.9, %v190_v43  ;;  %v710_v41 = vunpack.c.l.bf16 %v714_v37 }
 0x12d   : > { %870 = vtanh.f32 %v191_v45  ;;  %v241_v57 = vmul.f32 0.9, %v191_v45 }
 0x135   : > { %v869_v46 = vpop.eup %868 }
 0x137   : > { %v871_v47 = vpop.eup %870 }
 0x138   : > { %v195_v48 = vpack.c.bf16 %v871_v47, %v869_v46  ;;  %v711_v47 = vunpack.c.h.bf16 %v714_v37 }
 0x13a   : > { %666 = vst [vmem:[%s1136_s16 + $0x8] sm:$0xff] %v195_v48  ;;  %788 = vmatmul.mubr.bf16.vlgmr.msra.gmra.mrb[0].mxu1 %v195_v48 }
 0x13b   : > { %812 = vmatpush3.bf16.msra.mxu1 %v1086_v19  ;;  %827 = vmatprep.mubr.msk.bf16.mxu1 %vm982_vm0, %v981_v20  ;;  %v713_v19 = vld [vmem:[%s1176_s17 + $0x10] sm:$0xff]  }
 0x13c   : > { %813 = vmatprep.subr.bf16.mxu1 %v981_v20 }
 0x13f   : > { %814 = vmatpush3.bf16.msra.mxu1 %v1092_v21 }
 0x140   : > { %815 = vmatprep.subr.bf16.mxu1 %v981_v20 }
 0x143   : > { %816 = vmatpush3.bf16.msra.mxu1 %v1107_v22 }
 0x144   : > { %817 = vmatprep.subr.bf16.mxu1 %v981_v20 }
 0x147   : > { %818 = vmatpush3.bf16.msra.mxu1 %v1115_v23  ;;  %v706_v23 = vunpack.c.l.bf16 %v713_v19 }
 0x148   : > { %819 = vmatprep.subr.bf16.mxu1 %v981_v20 }
 0x14b   : > { %820 = vmatpush3.bf16.msra.mxu1 %v1123_v25 }
 0x14c   : > { %821 = vmatprep.subr.bf16.mxu1 %v981_v20 }
 0x14f   : > { %822 = vmatpush3.bf16.msra.mxu1 %v1132_v28 }
 0x150   : > { %823 = vmatprep.subr.bf16.mxu1 %v981_v20 }
 0x153   : > { %824 = vmatpush3.bf16.msra.mxu1 %v1145_v29  ;;  %v707_v29 = vunpack.c.h.bf16 %v713_v19 }
 0x154   : > { %825 = vmatprep.subr.bf16.mxu1 %v981_v20 }
 0x157   : > { %826 = vmatpush3.bf16.msra.mxu1 %v661_v30 }
 0x20d   : > { %v233_v50 = vpop.f32.mrb[0].mxu1 }
 0x20e   : > { %v242_v52 = vmul.f32 0.1, %v233_v50  ;;  %v789_v54 = vpop.f32.mrb[1].mxu1 }
 0x20f   : > { %v236_v55 = vpop.f32.mrb[2].mxu1 }
 0x210   : > { %v244_v56 = vadd.f32 %v242_v52, %v240_v51  ;;  %v243_v58 = vmul.f32 0.1, %v236_v55  ;;  %v790_v60 = vpop.f32.mrb[3].mxu1  ;;  %v685_v51 = vld [vmem:[%s1236_s2] ss:$0 sm:$0xff] (%p75_p2)  ;;  %s984_s2 = smov (%p75_p2), [#allocation10]  }
 0x211   :  { %s603_s20 = sshll.u32 (%p75_p2), %s984_s2, 4  ;;  %s604_s20 = int_to_ptr.vmem [resolvable:$true] %s603_s20 }
 0x212   : > { %v253_v61 = vadd.f32 %v702_v53, %v244_v56  ;;  %v245_v62 = vadd.f32 %v243_v58, %v241_v57  ;;  %v983_v57 = vmov (%p75_p2), 0   ;;  %s925_s21 = scalar_lea.vmem (%p75_p2), %s604_s20, 128  ;;  %p930_p4 = scmp.lt.s32.totalorder (%p75_p2), %s604_s20, %s604_s20 }
 0x213   :  { %880 = vset.pattern.permute.xlu0 (%p75_p2), %v983_v57  ;;  %p926_p3 = scmp.ne.s32.totalorder (%p75_p2), %s604_s20, %s925_s21  ;;  %p931_p5 = scmp.lt.s32.totalorder (%p75_p2), %s925_s21, %s925_s21 }
 0x214   : > { %v254_v63 = vadd.f32 %v703_v59, %v245_v62  ;;  %872 = vtanh.f32 %v253_v61  ;;  %v303_v21 = vmul.f32 0.9, %v253_v61 }
 0x215   :  { %p932_p6 = por (%p75_p2), %p931_p5, %p930_p4 }
 0x216   : > { %874 = vtanh.f32 %v254_v63  ;;  %v304_v27 = vmul.f32 0.9, %v254_v63 }
 0x217   :  { %p933_p7 = pnand (%p75_p2), %p932_p6, %p926_p3 }
 0x21e   : > { %v873_v0 = vpop.eup %872 }
 0x220   : > { %v875_v17 = vpop.eup %874 }
 0x221   : > { %v258_v18 = vpack.c.bf16 %v875_v17, %v873_v0 }
 0x223   : > { %673 = vst [vmem:[%s1136_s16 + $0x10] sm:$0xff] %v258_v18  ;;  %808 = vmatmul.mubr.bf16.vlgmr.msra.gmra.mrb[4].mxu0 %v258_v18 }
 0x2f6   : > { %v296_v20 = vpop.f32.mrb[4].mxu0 }
 0x2f7   : > { %v305_v22 = vmul.f32 0.1, %v296_v20  ;;  %v809_v24 = vpop.f32.mrb[5].mxu0 }
 0x2f8   : > { %v299_v25 = vpop.f32.mrb[6].mxu0 }
 0x2f9   : > { %v307_v26 = vadd.f32 %v305_v22, %v303_v21  ;;  %v306_v28 = vmul.f32 0.1, %v299_v25  ;;  %v810_v30 = vpop.f32.mrb[7].mxu0 }
 0x2fb   : > { %v316_v31 = vadd.f32 %v706_v23, %v307_v26  ;;  %v308_v32 = vadd.f32 %v306_v28, %v304_v27  ;;  %v686_v28 = vld [vmem:[#allocation4] ss:$0 sm:$0xff] (%p75_p2) }
 0x2fd   : > { %v317_v33 = vadd.f32 %v707_v29, %v308_v32  ;;  %876 = vtanh.f32 %v316_v31  ;;  %v366_v39 = vmul.f32 0.9, %v316_v31 }
 0x2ff   : > { %878 = vtanh.f32 %v317_v33  ;;  %v367_v45 = vmul.f32 0.9, %v317_v33 }
 0x307   : > { %v877_v34 = vpop.eup %876 }
 0x309   : > { %v879_v35 = vpop.eup %878 }
 0x30a   : > { %v321_v36 = vpack.c.bf16 %v879_v35, %v877_v34 }
 0x30c   : > { %680 = vst [vmem:[%s1136_s16 + $0x18] sm:$0xff] %v321_v36  ;;  %828 = vmatmul.mubr.bf16.vlgmr.msra.gmra.mrb[4].mxu1 %v321_v36 }
 0x313   :  { %v383_v50 = vld [vmem:[#allocation3] sm:$0xff] (%p75_p2)  ;;  %v384_v52 = vld [vmem:[#allocation3 + $0x8] sm:$0xff] (%p75_p2)  ;;  %v385_v58 = vld [vmem:[#allocation3 + $0x10] sm:$0xff] (%p75_p2) }
 0x314   :  { %v392_v53 = vunpack.c.l.bf16 (%p75_p2), %v383_v50  ;;  %v393_v54 = vunpack.c.h.bf16 (%p75_p2), %v383_v50  ;;  %v394_v55 = vunpack.c.l.bf16 (%p75_p2), %v384_v52  ;;  %v395_v56 = vunpack.c.h.bf16 (%p75_p2), %v384_v52  ;;  %v386_v2 = vld [vmem:[#allocation3 + $0x18] sm:$0xff] (%p75_p2)  ;;  %v387_v7 = vld [vmem:[#allocation3 + $0x20] sm:$0xff] (%p75_p2)  ;;  %v388_v12 = vld [vmem:[#allocation3 + $0x28] sm:$0xff] (%p75_p2) }
 0x315   :  { %v396_v62 = vunpack.c.l.bf16 (%p75_p2), %v385_v58  ;;  %v397_v1 = vunpack.c.h.bf16 (%p75_p2), %v385_v58  ;;  %v398_v4 = vunpack.c.l.bf16 (%p75_p2), %v386_v2  ;;  %v399_v6 = vunpack.c.h.bf16 (%p75_p2), %v386_v2  ;;  %v389_v0 = vld [vmem:[#allocation3 + $0x30] sm:$0xff] (%p75_p2)  ;;  %v390_v21 = vld [vmem:[#allocation3 + $0x38] sm:$0xff] (%p75_p2) }
 0x316   :  { %v414_v59 = vmul.f32 (%p75_p2), %v685_v51, %v392_v53  ;;  %v416_v60 = vmul.f32 (%p75_p2), %v685_v51, %v394_v55  ;;  %v415_v61 = vmul.f32 (%p75_p2), %v685_v51, %v393_v54  ;;  %v417_v63 = vmul.f32 (%p75_p2), %v685_v51, %v395_v56 }
 0x317   :  { %v418_v3 = vmul.f32 (%p75_p2), %v685_v51, %v396_v62  ;;  %v419_v5 = vmul.f32 (%p75_p2), %v685_v51, %v397_v1  ;;  %v420_v8 = vmul.f32 (%p75_p2), %v685_v51, %v398_v4  ;;  %v400_v9 = vunpack.c.l.bf16 (%p75_p2), %v387_v7 }
 0x318   :  { %430 = vadd.xlane.f32.xlu0 (%p75_p2), %v414_v59  ;;  %434 = vadd.xlane.f32.xlu1 (%p75_p2), %v416_v60  ;;  %v421_v10 = vmul.f32 (%p75_p2), %v685_v51, %v399_v6  ;;  %v401_v11 = vunpack.c.h.bf16 (%p75_p2), %v387_v7  ;;  %v402_v14 = vunpack.c.l.bf16 (%p75_p2), %v388_v12  ;;  %v403_v16 = vunpack.c.h.bf16 (%p75_p2), %v388_v12 }
 0x319   :  { %v422_v13 = vmul.f32 (%p75_p2), %v685_v51, %v400_v9  ;;  %v405_v20 = vunpack.c.h.bf16 (%p75_p2), %v389_v0  ;;  %v406_v23 = vunpack.c.l.bf16 (%p75_p2), %v390_v21  ;;  %v407_v25 = vunpack.c.h.bf16 (%p75_p2), %v390_v21 }
 0x31a   :  { %v423_v15 = vmul.f32 (%p75_p2), %v685_v51, %v401_v11  ;;  %v425_v19 = vmul.f32 (%p75_p2), %v685_v51, %v403_v16 }
 0x31b   :  { %v427_v24 = vmul.f32 (%p75_p2), %v685_v51, %v405_v20  ;;  %v428_v26 = vmul.f32 (%p75_p2), %v685_v51, %v406_v23  ;;  %v429_v27 = vmul.f32 (%p75_p2), %v685_v51, %v407_v25 }
 0x31c   :  { %432 = vadd.xlane.f32.xlu0 (%p75_p2), %v415_v61  ;;  %436 = vadd.xlane.f32.xlu1 (%p75_p2), %v417_v63 }
 0x320   :  { %438 = vadd.xlane.f32.xlu0 (%p75_p2), %v418_v3  ;;  %440 = vadd.xlane.f32.xlu1 (%p75_p2), %v419_v5 }
 0x324   :  { %442 = vadd.xlane.f32.xlu0 (%p75_p2), %v420_v8  ;;  %444 = vadd.xlane.f32.xlu1 (%p75_p2), %v421_v10 }
 0x328   :  { %446 = vadd.xlane.f32.xlu0 (%p75_p2), %v422_v13  ;;  %448 = vadd.xlane.f32.xlu1 (%p75_p2), %v423_v15 }
 0x32c   :  { %452 = vadd.xlane.f32.xlu1 (%p75_p2), %v425_v19 }
 0x330   :  { %456 = vadd.xlane.f32.xlu1 (%p75_p2), %v427_v24 }
 0x334   :  { %460 = vadd.xlane.f32.xlu1 (%p75_p2), %v429_v27 }
 0x3a5   :  { %v431_v29 = vpop.xlane.xlu0 (%p75_p2), %430  ;;  %v435_v30 = vpop.xlane.xlu1 (%p75_p2), %434 }
 0x3a9   :  { %v433_v31 = vpop.xlane.xlu0 (%p75_p2), %432  ;;  %v437_v32 = vpop.xlane.xlu1 (%p75_p2), %436 }
 0x3ad   :  { %v439_v33 = vpop.xlane.xlu0 (%p75_p2), %438  ;;  %v441_v34 = vpop.xlane.xlu1 (%p75_p2), %440 }
 0x3b1   :  { %v443_v35 = vpop.xlane.xlu0 (%p75_p2), %442  ;;  %v445_v36 = vpop.xlane.xlu1 (%p75_p2), %444 }
 0x3b5   :  { %v447_v37 = vpop.xlane.xlu0 (%p75_p2), %446 }
 0x3df   : > { %v359_v38 = vpop.f32.mrb[4].mxu1 }
 0x3e0   : > { %v368_v40 = vmul.f32 0.1, %v359_v38  ;;  %v829_v42 = vpop.f32.mrb[5].mxu1  ;;  %77 = sbr.rel (!%p75_p2) target bundleno = 48 (0x30), region = 63 }
 0x3e1   : > { %v362_v43 = vpop.f32.mrb[6].mxu1 }
 0x3e2   : > { %v370_v44 = vadd.f32 %v368_v40, %v366_v39  ;;  %v369_v46 = vmul.f32 0.1, %v362_v43  ;;  %v830_v48 = vpop.f32.mrb[7].mxu1  ;;  %v449_v39 = vpop.xlane.xlu1 (%p75_p2), %448  ;;  %v504_v40 = vlaneseq (%p75_p2) }
 0x3e4   : > { %v379_v18 = vadd.f32 %v710_v41, %v370_v44   ;;  %v371_v49 = vadd.f32 %v369_v46, %v367_v45  ;;  %v505_v43 = vand.u32 (%p75_p2), 127, %v504_v40  ;;  %v507_v45 = vshrl.u32 (%p75_p2), %v504_v40, 7 }
 0x3e5   :  { %v404_v18 = vunpack.c.l.bf16 (%p75_p2), %v389_v0 }
 0x3e6   : > { %v380_v17 = vadd.f32 %v711_v47, %v371_v49   ;;  %v453_v42 = vpop.xlane.xlu1 (%p75_p2), %452  ;;  %v510_v46 = vadd.s32 (%p75_p2), 4294967288, %v505_v43  ;;  %v508_v49 = vsub.s32 (%p75_p2), %v505_v43, %v507_v45 }
 0x3e7   :  { %v424_v17 = vmul.f32 %v685_v51, %v402_v14  ;;  %v426_v22 = vmul.f32 %v685_v51, %v404_v18 }
 0x3e8   :  { %v513_v50 = vsub.s32 %v510_v46, %v507_v45 }
 0x3e9   :  { %450 = vadd.xlane.f32.xlu0 %v424_v17 }
 0x3ea   :  { %v457_v47 = vpop.xlane.xlu1 %456 }
 0x3ed   :  { %454 = vadd.xlane.f32.xlu0 %v426_v22 }
 0x3ee   :  { %v461_v57 = vpop.xlane.xlu1 %460 }
 0x3f1   :  { %458 = vadd.xlane.f32.xlu0 %v428_v26 }
 0x407   :  { %469 = vperm.xlu0 %880, %v686_v28  }
 0x476   :  { %v451_v38 = vpop.xlane.xlu0 %450 }
 0x47a   :  { %v455_v41 = vpop.xlane.xlu0 %454 }
 0x47e   :  { %v459_v44 = vpop.xlane.xlu0 %458 }
 0x486   :  { %v470_v48 = vpop.permute.xlu0 %469 }
 0x487   :  { %v472_v51 = vadd.f32 %v470_v48, %v431_v29  ;;  %v473_v52 = vadd.f32 %v470_v48, %v433_v31  ;;  %v474_v53 = vadd.f32 %v470_v48, %v435_v30  ;;  %v475_v54 = vadd.f32 %v470_v48, %v437_v32 }
 0x488   :  { %v476_v55 = vadd.f32 %v470_v48, %v439_v33  ;;  %v477_v56 = vadd.f32 %v470_v48, %v441_v34  ;;  %v478_v58 = vadd.f32 %v470_v48, %v443_v35  ;;  %v479_v59 = vadd.f32 %v470_v48, %v445_v36 }
 0x489   :  { %v480_v60 = vadd.f32 %v470_v48, %v447_v37  ;;  %v481_v61 = vadd.f32 %v470_v48, %v449_v39  ;;  %v482_v62 = vadd.f32 %v470_v48, %v451_v38  ;;  %v483_v63 = vadd.f32 %v470_v48, %v453_v42 }
 0x48a   :  { %v484_v1 = vadd.f32 %v470_v48, %v455_v41  ;;  %v485_v2 = vadd.f32 %v470_v48, %v457_v47  ;;  %v509_v3 = vrot.slane %v472_v51, %v508_v49  ;;  %v514_v4 = vrot.slane %v473_v52, %v513_v50 }
 0x48b   :  { %v520_v5 = vrot.slane %v474_v53, %v508_v49  ;;  %v524_v6 = vrot.slane %v475_v54, %v513_v50  ;;  %v486_v7 = vadd.f32 %v470_v48, %v459_v44  ;;  %v487_v8 = vadd.f32 %v470_v48, %v461_v57 }
 0x48c   :  { %v529_v9 = vrot.slane %v476_v55, %v508_v49  ;;  %v533_v10 = vrot.slane %v477_v56, %v513_v50  ;;  %v516_v11 = vsel %vm515_vm1, %v514_v4, %v509_v3  ;;  %v538_v13 = vrot.slane %v478_v58, %v508_v49 }
 0x48d   :  { %v525_v12 = vsel %vm515_vm1, %v524_v6, %v520_v5  ;;  %v542_v14 = vrot.slane %v479_v59, %v513_v50  ;;  %v547_v16 = vrot.slane %v480_v60, %v508_v49  ;;  %v551_v0 = vrot.slane %v481_v61, %v513_v50 }
 0x48e   :  { %v534_v15 = vsel %vm515_vm1, %v533_v10, %v529_v9  ;;  %v556_v17 = vrot.slane %v482_v62, %v508_v49  ;;  %v560_v18 = vrot.slane %v483_v63, %v513_v50  ;;  %v565_v19 = vrot.slane %v484_v1, %v508_v49 }
 0x48f   :  { %v569_v20 = vrot.slane %v485_v2, %v513_v50  ;;  %v581_v21 = vsel %vm580_vm2, %v525_v12, %v516_v11  ;;  %v543_v22 = vsel %vm515_vm1, %v542_v14, %v538_v13  ;;  %v574_v23 = vrot.slane %v486_v7, %v508_v49 }
 0x490   :  { %v578_v24 = vrot.slane %v487_v8, %v513_v50  ;;  %v583_v25 = vsel %vm582_vm3, %v534_v15, %v581_v21  ;;  %v552_v26 = vsel %vm515_vm1, %v551_v0, %v547_v16  ;;  %v561_v28 = vsel %vm515_vm1, %v560_v18, %v556_v17 }
 0x491   :  { %v585_v27 = vsel %vm584_vm4, %v543_v22, %v583_v25  ;;  %v570_v30 = vsel %vm515_vm1, %v569_v20, %v565_v19 }
 0x492   :  { %v587_v29 = vsel %vm586_vm5, %v552_v26, %v585_v27  ;;  %v579_v32 = vsel %vm515_vm1, %v578_v24, %v574_v23 }
 0x493   :  { %v589_v31 = vsel %vm588_vm6, %v561_v28, %v587_v29 }
 0x494   :  { %v591_v33 = vsel %vm590_vm7, %v570_v30, %v589_v31 }
 0x495   :  { %v593_v34 = vsel %vm592_vm8, %v579_v32, %v591_v33 }
 0x496   :  { %596 = vst.msk [vmem:[#allocation10] sm:$0xff] %vm595_vm9, %v593_v34 }
 0x497   :  { %936 = shalt.err (!%p933_p7)
}
 0x498   :  { %s937_s24 = scalar_lea.hbm %s1238_s4, 128 }
 0x499   :  { %p938_p8 = scmp.ne.s32.totalorder %s1238_s4, %s937_s24  ;;  %p941_p9 = scmp.lt.u32.totalorder %s937_s24, %s1238_s4 }
 0x49b   :  { %p943_p10 = pnand %p941_p9, %p938_p8 }
 0x49d   :  { %946 = shalt.err (!%p943_p10)
}
 0x49e   :  { %606 = dma.vmem_to_hbm [thread:$0]  %s604_s20, 128, %s1238_s4, [#allocation7]  }
 0x49f   :  { %963 = dma.done.wait [#allocation7], 128  }
 0x4a0   :  { %964 = vsyncadd [#allocation7], 4294967168 }
 0x4a1   :  { %610 = vsyncpa [#allocation6], 1 }
 0x4a2   :  { %611 = vsyncpa [#allocation9], 1 }
 0x4a3   :  { %612 = vsyncpa [#allocation7], 1 }

</bundles_post_ra>
